<compile_context>
chip_gen: v6e
topology: v6e:2x2x1
jax: 0.10.0
libtpu: 0.0.40
codegen_flags: <defaults>
</compile_context>

<pallas_src>
import jax
import jax.numpy as jnp
from jax import lax
from jax.experimental import pallas as pl
from jax.experimental.pallas import tpu as pltpu

LANES = 128
TARGET_BLOCK_BYTES = 4 * 1024 * 1024      # ~4 MiB per input block per grid step
VMEM_LIMIT_BYTES = 32 * 1024 * 1024       # 2 inputs x 2 buffers x 4 MiB + slack
MIN_PALLAS_ELEMS = 64 * 1024              # below this, fused XLA beats kernel launch


def _cdiv(a, b):
    return -(-a // b)


def _round_up(a, b):
    return _cdiv(a, b) * b


def _row_granule(dtype):
    """Sublane packing granule for the second-minor dim, by element size."""
    itemsize = jnp.dtype(dtype).itemsize
    if itemsize >= 4:
        return 8
    if itemsize == 2:
        return 16
    return 32


def _default_num_splits():
    """2-way megacore split only on chips with two TensorCores (v7x-class)."""
    try:
        kind = jax.devices()[0].device_kind.lower()
    except Exception:
        return 1
    return 2 if ("v7" in kind or "7x" in kind) else 1


def _plan_tiling(n_rows, granule, max_rows, want_splits):
    """Pick (num_splits, tile_rows, tiles_per_split).

    Guarantees: tile_rows is granule-aligned, <= min(max_rows, n_rows), every
    grid block overlaps real data (no fully out-of-bounds block, no clamping),
    and the splits get exactly equal tile counts.
    """
    max_tile = min(max_rows, (n_rows // granule) * granule)   # <= n_rows
    tried = (want_splits, 1) if want_splits > 1 else (1,)
    for s in tried:
        t = _cdiv(n_rows, s * max_tile)                       # min tiles per split
        tile_rows = min(max_tile, _round_up(_cdiv(n_rows, s * t), granule))
        t = _cdiv(_cdiv(n_rows, tile_rows), s)                # rebalance, keep coverage
        if (s * t - 1) * tile_rows < n_rows:                  # last block overlaps data
            return s, tile_rows, t
    raise AssertionError("unreachable: the single-split plan always satisfies coverage")


def _make_mae_kernel(tile_rows, last_valid_rows, needs_ragged):
    """Grid (split, tile): acc(1,128) += row-reduced |x - y|; store once per split."""

    def kernel(x_ref, y_ref, o_ref, acc_ref):
        t = pl.program_id(1)

        @pl.when(t == 0)
        def _init():
            acc_ref[...] = jnp.zeros_like(acc_ref)

        x = x_ref[...].astype(jnp.float32)
        y = y_ref[...].astype(jnp.float32)
        d = jnp.abs(x - y)

        if needs_ragged:
            # Only the single, globally-last block is ragged; everything else
            # stays on the pure sub/abs/accumulate fast path.
            is_last_block = jnp.logical_and(
                pl.program_id(0) == pl.num_programs(0) - 1,
                t == pl.num_programs(1) - 1,
            )

            @pl.when(jnp.logical_not(is_last_block))
            def _steady():
                acc_ref[...] += jnp.sum(d, axis=0, keepdims=True)

            @pl.when(is_last_block)
            def _ragged_tail():
                rows = lax.broadcasted_iota(jnp.int32, (tile_rows, LANES), 0)
                masked = jnp.where(rows < last_valid_rows, d, 0.0)
                acc_ref[...] += jnp.sum(masked, axis=0, keepdims=True)
        else:
            acc_ref[...] += jnp.sum(d, axis=0, keepdims=True)

        @pl.when(t == pl.num_programs(1) - 1)
        def _finalize():
            o_ref[...] = acc_ref[...].reshape(1, 1, LANES)

    return kernel


def mae_loss(inp, target, *, min_pallas_elems=MIN_PALLAS_ELEMS, num_splits=None):
    """Equivalent of torch.abs(input - target).mean(), accumulated in f32."""
    assert inp.shape == target.shape, (inp.shape, target.shape)
    total_n = int(inp.size)
    granule = max(_row_granule(inp.dtype), _row_granule(target.dtype))

    # Tiny inputs (launch overhead dominates) and element counts that are not a
    # multiple of 128 lanes (would need a full padding copy) use fused XLA.
    # TODO(synk): cover total_n % 128 != 0 in-kernel via a flat 1-D lane mask.
    if (total_n < max(min_pallas_elems, granule * LANES)) or (total_n % LANES != 0):
        return jnp.mean(jnp.abs(inp.astype(jnp.float32) - target.astype(jnp.float32)))

    n_rows = total_n // LANES
    x2 = jnp.reshape(inp, (n_rows, LANES))       # contiguous reshape: no HBM copy
    y2 = jnp.reshape(target, (n_rows, LANES))

    in_item = jnp.dtype(inp.dtype).itemsize
    tg_item = jnp.dtype(target.dtype).itemsize
    max_rows = max(granule, TARGET_BLOCK_BYTES // (LANES * max(in_item, tg_item)))
    want_splits = _default_num_splits() if num_splits is None else int(num_splits)
    splits, tile_rows, tiles_per_split = _plan_tiling(
        n_rows, granule, max_rows, want_splits)

    n_blocks = splits * tiles_per_split
    needs_ragged = (n_blocks * tile_rows) != n_rows
    last_valid_rows = n_rows - (n_blocks - 1) * tile_rows

    kernel = _make_mae_kernel(tile_rows, last_valid_rows, needs_ragged)

    def in_index_map(s, t):
        return (s * tiles_per_split + t, 0)

    partials = pl.pallas_call(
        kernel,
        out_shape=jax.ShapeDtypeStruct((splits, 1, LANES), jnp.float32),
        grid_spec=pltpu.PrefetchScalarGridSpec(
            num_scalar_prefetch=0,
            grid=(splits, tiles_per_split),
            in_specs=[
                pl.BlockSpec((tile_rows, LANES), in_index_map),
                pl.BlockSpec((tile_rows, LANES), in_index_map),
            ],
            out_specs=pl.BlockSpec((1, 1, LANES), lambda s, t: (s, 0, 0)),
            scratch_shapes=[pltpu.VMEM((1, LANES), jnp.float32)],
        ),
        compiler_params=pltpu.CompilerParams(
            dimension_semantics=("parallel", "arbitrary"),
            vmem_limit_bytes=VMEM_LIMIT_BYTES,
        ),
        cost_estimate=pl.CostEstimate(
            flops=3 * total_n,
            transcendentals=0,
            bytes_accessed=total_n * (in_item + tg_item) + splits * LANES * 4,
        ),
    )(x2, y2)

    # Sum the tiny lane-dense per-split partials and divide by the true N.
    return jnp.sum(partials) / jnp.float32(total_n)


if __name__ == "__main__":
    key = jax.random.PRNGKey(0)
    k1, k2, k3, k4, k5, k6, k7, k8 = jax.random.split(key, 8)

    # 1) Small (B, C, H, W) inputs consistent with MAELoss.forward; force the
    #    Pallas path so the kernel itself runs at this size.
    x = jax.random.normal(k1, (2, 4, 16, 16), dtype=jnp.float32)
    t = jax.random.normal(k2, (2, 4, 16, 16), dtype=jnp.float32)
    loss = mae_loss(x, t, min_pallas_elems=0)
    jax.block_until_ready(loss)
    ref = jnp.mean(jnp.abs(x - t))
    assert jnp.allclose(loss, ref, rtol=1e-5, atol=1e-6), (loss, ref)

    # 2) Ragged row count (n_rows not tile-aligned) exercises the pl.when-gated
    #    tail mask.
    xr = jax.random.normal(k3, (2, 4, 17, 16), dtype=jnp.float32)
    tr = jax.random.normal(k4, (2, 4, 17, 16), dtype=jnp.float32)
    loss_r = mae_loss(xr, tr, min_pallas_elems=0)
    jax.block_until_ready(loss_r)
    ref_r = jnp.mean(jnp.abs(xr - tr))
    assert jnp.allclose(loss_r, ref_r, rtol=1e-5, atol=1e-6), (loss_r, ref_r)

    # 3) bf16 inputs: native-dtype blocks (16-row granule), per-tile f32 cast.
    xb = jax.random.normal(k5, (2, 4, 32, 32), dtype=jnp.bfloat16)
    tb = jax.random.normal(k6, (2, 4, 32, 32), dtype=jnp.bfloat16)
    loss_b = mae_loss(xb, tb, min_pallas_elems=0)
    jax.block_until_ready(loss_b)
    ref_b = jnp.mean(jnp.abs(xb.astype(jnp.float32) - tb.astype(jnp.float32)))
    assert jnp.allclose(loss_b, ref_b, rtol=1e-5, atol=1e-6), (loss_b, ref_b)

    # 4) Moderately sized input takes the Pallas path with the default threshold.
    xl = jax.random.normal(k7, (2, 4, 128, 128), dtype=jnp.float32)
    tl = jax.random.normal(k8, (2, 4, 128, 128), dtype=jnp.float32)
    loss_l = mae_loss(xl, tl)
    jax.block_until_ready(loss_l)
    ref_l = jnp.mean(jnp.abs(xl - tl))
    assert jnp.allclose(loss_l, ref_l, rtol=1e-5, atol=1e-6), (loss_l, ref_l)

    print("KERNEL_OK")
</pallas_src>

<mosaic_0001>
module attributes {stable_mosaic.version = 11 : i64} {
  func.func @kernel(%arg0: i32, %arg1: i32, %arg2: memref<16x128xf32, #tpu.memory_space<vmem>>, %arg3: memref<16x128xf32, #tpu.memory_space<vmem>>, %arg4: memref<1x1x128xf32, #tpu.memory_space<vmem>>, %arg5: memref<1x128xf32, #tpu.memory_space<vmem>>) attributes {dimension_semantics = [#tpu.dimension_semantics<parallel>, #tpu.dimension_semantics<arbitrary>], iteration_bounds = array<i64: 1, 1>, scalar_prefetch = 0 : i64, scratch_operands = 1 : i64, tpu.core_type = #tpu.core_type<tc>, window_params = [{transform_indices = @transform_0, window_bounds = array<i64: 16, 128>}, {transform_indices = @transform_1, window_bounds = array<i64: 16, 128>}, {transform_indices = @transform_2, window_bounds = array<i64: 1, 1, 128>}]} {
    %c0_i32 = arith.constant 0 : i32
    %0 = arith.cmpi eq, %arg1, %c0_i32 : i32
    %1 = arith.extui %0 : i1 to i32
    %c0_i32_0 = arith.constant 0 : i32
    %2 = arith.cmpi ne, %1, %c0_i32_0 : i32
    scf.if %2 {
      %cst_10 = arith.constant 0.000000e+00 : f32
      %15 = vector.broadcast %cst_10 : f32 to vector<1x128xf32>
      %c0_11 = arith.constant 0 : index
      %c0_12 = arith.constant 0 : index
      %16 = vector.load %arg5[%c0_11, %c0_12] : memref<1x128xf32, #tpu.memory_space<vmem>>, vector<1x128xf32>
      tpu.vector_store %arg5[%c0_11, %c0_12], %15 {strides = array<i32>} : memref<1x128xf32, #tpu.memory_space<vmem>>, vector<1x128xf32>,
    } else {
    }
    %c0 = arith.constant 0 : index
    %c0_1 = arith.constant 0 : index
    %3 = vector.load %arg2[%c0, %c0_1] : memref<16x128xf32, #tpu.memory_space<vmem>>, vector<16x128xf32>
    %c0_2 = arith.constant 0 : index
    %c0_3 = arith.constant 0 : index
    %4 = vector.load %arg3[%c0_2, %c0_3] : memref<16x128xf32, #tpu.memory_space<vmem>>, vector<16x128xf32>
    %5 = arith.subf %3, %4 : vector<16x128xf32>
    %6 = math.absf %5 : vector<16x128xf32>
    %c0_4 = arith.constant 0 : index
    %c0_5 = arith.constant 0 : index
    %7 = vector.load %arg5[%c0_4, %c0_5] : memref<1x128xf32, #tpu.memory_space<vmem>>, vector<1x128xf32>
    %cst = arith.constant dense<0.000000e+00> : vector<128xf32>
    %8 = vector.multi_reduction <add>, %6, %cst [0] : vector<16x128xf32> to vector<128xf32>
    %9 = vector.shape_cast %8 : vector<128xf32> to vector<1x128xf32>
    %10 = arith.addf %7, %9 : vector<1x128xf32>
    %c0_6 = arith.constant 0 : index
    %c0_7 = arith.constant 0 : index
    %11 = vector.load %arg5[%c0_6, %c0_7] : memref<1x128xf32, #tpu.memory_space<vmem>>, vector<1x128xf32>
    tpu.vector_store %arg5[%c0_6, %c0_7], %10 {strides = array<i32>} : memref<1x128xf32, #tpu.memory_space<vmem>>, vector<1x128xf32>,
    %c0_i32_8 = arith.constant 0 : i32
    %12 = arith.cmpi eq, %arg1, %c0_i32_8 : i32
    %13 = arith.extui %12 : i1 to i32
    %c0_i32_9 = arith.constant 0 : i32
    %14 = arith.cmpi ne, %13, %c0_i32_9 : i32
    scf.if %14 {
      %c0_10 = arith.constant 0 : index
      %c0_11 = arith.constant 0 : index
      %15 = vector.load %arg5[%c0_10, %c0_11] : memref<1x128xf32, #tpu.memory_space<vmem>>, vector<1x128xf32>
      %16 = vector.shape_cast %15 : vector<1x128xf32> to vector<1x1x128xf32>
      %c0_12 = arith.constant 0 : index
      %c0_13 = arith.constant 0 : index
      %c0_14 = arith.constant 0 : index
      %17 = vector.load %arg4[%c0_12, %c0_13, %c0_14] : memref<1x1x128xf32, #tpu.memory_space<vmem>>, vector<1x1x128xf32>
      tpu.vector_store %arg4[%c0_12, %c0_13, %c0_14], %16 {strides = array<i32>} : memref<1x1x128xf32, #tpu.memory_space<vmem>>, vector<1x1x128xf32>,
    } else {
    }
    return
  }
  func.func @transform_0(%arg0: i32, %arg1: i32) -> (i32, i32) {
    %c1_i32 = arith.constant 1 : i32
    %0 = arith.muli %arg0, %c1_i32 : i32
    %1 = arith.addi %0, %arg1 : i32
    %c0_i32 = arith.constant 0 : i32
    %c0_i32_0 = arith.constant 0 : i32
    return %1, %c0_i32 : i32, i32
  }
  func.func @transform_1(%arg0: i32, %arg1: i32) -> (i32, i32) {
    %c1_i32 = arith.constant 1 : i32
    %0 = arith.muli %arg0, %c1_i32 : i32
    %1 = arith.addi %0, %arg1 : i32
    %c0_i32 = arith.constant 0 : i32
    %c0_i32_0 = arith.constant 0 : i32
    return %1, %c0_i32 : i32, i32
  }
  func.func @transform_2(%arg0: i32, %arg1: i32) -> (i32, i32, i32) {
    %c0_i32 = arith.constant 0 : i32
    %c0_i32_0 = arith.constant 0 : i32
    %c0_i32_1 = arith.constant 0 : i32
    return %arg0, %c0_i32, %c0_i32_0 : i32, i32, i32
  }
}

</mosaic_0001>

<bundles_post_ra>
// kernel: tpu_custom_call.1
= control target key start
LH: loop header
LB: loop body
LE: loop exit
PB: predicated region body
PF: predicated region fallthrough
CT: control target
= control target key end

     0   :  { %7 = vsyncpa [#allocation4], 0  ;;  %s198_s0 = inlined_call_operand.hbm [shape: f32[16,128], index: 0, kind: input, shape index: {}]   ;;  %s199_s1 = inlined_call_operand.hbm [shape: f32[16,128], index: 1, kind: input, shape index: {}]   ;;  %s200_s2 = inlined_call_operand.hbm [shape: f32[1,1,128], index: 2, kind: output, shape index: {}]  }
   0x1   :  { %8 = vsyncpa [#allocation7], 0 }
   0x2   :  { %9 = vsyncpa [#allocation5], 0  ;;  %s168_s9 = smov [#allocation3]  }
   0x3   :  { %s19_s10 = sshll.u32 %s168_s9, 4  ;;  %s20_s10 = int_to_ptr.vmem [resolvable:$true] %s19_s10 }
   0x4   :  { %s110_s11 = scalar_lea.vmem %s20_s10, 256  ;;  %p115_p1 = scmp.lt.s32.totalorder %s20_s10, %s20_s10 }
   0x5   :  { %p111_p0 = scmp.ne.s32.totalorder %s20_s10, %s110_s11  ;;  %p116_p2 = scmp.lt.s32.totalorder %s110_s11, %s110_s11 }
   0x7   :  { %p117_p3 = por %p116_p2, %p115_p1 }
   0x9   :  { %p118_p4 = pnand %p117_p3, %p111_p0 }
   0xb   :  { %121 = shalt.err (!%p118_p4)
}
   0xc   :  { %s169_s12 = smov 128   ;;  %s170_s13 = smov 8  }
   0xd   :  { %25 = dma.hbm_to_vmem [thread:$0]  %s198_s0, 256, %s20_s10, [#allocation4], %s169_s12, %s169_s12, %s170_s13  }
   0xe   :  { %s171_s16 = smov [#allocation6]  }
   0xf   :  { %s35_s17 = sshll.u32 %s171_s16, 4  ;;  %s36_s17 = int_to_ptr.vmem [resolvable:$true] %s35_s17 }
  0x10   :  { %s130_s18 = scalar_lea.vmem %s36_s17, 256  ;;  %p135_p6 = scmp.lt.s32.totalorder %s36_s17, %s36_s17 }
  0x11   :  { %p131_p5 = scmp.ne.s32.totalorder %s36_s17, %s130_s18  ;;  %p136_p7 = scmp.lt.s32.totalorder %s130_s18, %s130_s18 }
  0x13   :  { %p137_p8 = por %p136_p7, %p135_p6 }
  0x15   :  { %p138_p9 = pnand %p137_p8, %p131_p5 }
  0x17   :  { %141 = shalt.err (!%p138_p9)
}
  0x18   :  { %41 = dma.hbm_to_vmem [thread:$0]  %s199_s1, 256, %s36_s17, [#allocation7], %s169_s12, %s169_s12, %s170_s13  }
  0x19   :  { %162 = dma.done.wait [#allocation4], 256  }
  0x1a   :  { %163 = vsyncadd [#allocation4], 4294967040 }
  0x1b   :  { %164 = dma.done.wait [#allocation7], 256  }
  0x1c   :  { %165 = vsyncadd [#allocation7], 4294967040  ;;  %v172_v0 = vmov 0.0   ;;  %v57_v1 = vld [vmem:[#allocation3] sm:$0xff]  ;;  %v58_v2 = vld [vmem:[#allocation3 + $0x8] sm:$0xff]  ;;  %s173_s0 = smov [#allocation8]  }
  0x1d   :  { %56 = vst [vmem:[#allocation2] sm:$0x1] %v172_v0  ;;  %v59_v3 = vld [vmem:[#allocation6] sm:$0xff]  ;;  %v60_v4 = vld [vmem:[#allocation6 + $0x8] sm:$0xff]  ;;  %s86_s1 = sshll.u32 %s173_s0, 4  ;;  %s87_s1 = int_to_ptr.vmem [resolvable:$true] %s86_s1 }
  0x1e   :  { %v61_v5 = vsub.f32 %v57_v1, %v59_v3  ;;  %v62_v6 = vsub.f32 %v58_v2, %v60_v4  ;;  %s142_s21 = scalar_lea.vmem %s87_s1, 16  ;;  %s146_s22 = scalar_lea.vmem %s87_s1, 32 }
  0x1f   :  { %p143_p10 = scmp.ne.s32.totalorder %s87_s1, %s142_s21  ;;  %p147_p11 = scmp.lt.s32.totalorder %s87_s1, %s87_s1 }
  0x20   :  { %v63_v7 = vand.u32 2147483647, %v61_v5  ;;  %v64_v8 = vand.u32 2147483647, %v62_v6  ;;  %p148_p12 = scmp.lt.s32.totalorder %s146_s22, %s142_s21 }
  0x22   :  { %v66_v9 = vadd.f32 %v64_v8, %v63_v7  ;;  %p149_p13 = por %p148_p12, %p147_p11 }
  0x24   :  { %v67_v10 = vrot.slane %v66_v9, 4  ;;  %v65_v15 = vld [vmem:[#allocation2] sm:$0x1]  ;;  %p150_p0 = pnand %p149_p13, %p143_p10 }
  0x26   :  { %v68_v11 = vadd.f32 %v67_v10, %v66_v9 }
  0x28   :  { %v69_v12 = vrot.slane %v68_v11, 2 }
  0x2a   :  { %v70_v13 = vadd.f32 %v69_v12, %v68_v11 }
  0x2c   :  { %v71_v14 = vrot.slane %v70_v13, 1 }
  0x2e   :  { %v72_v16 = vadd.f32 %v71_v14, %v70_v13 }
  0x30   :  { %v73_v17 = vadd.f32 %v72_v16, %v65_v15 }
  0x32   :  { %74 = vst [vmem:[#allocation2] sm:$0x1] %v73_v17 }
  0x39   :  { %v78_v18 = vld [vmem:[#allocation2] sm:$0x1] }
  0x3a   :  { %79 = vst [vmem:[#allocation8] sm:$0x1] %v78_v18 }
  0x3b   :  { %153 = shalt.err (!%p150_p0)
}
  0x3c   :  { %89 = dma.vmem_to_hbm [thread:$0]  %s87_s1, 16, %s200_s2, [#allocation5]  }
  0x3d   :  { %166 = dma.done.wait [#allocation5], 16  }
  0x3e   :  { %167 = vsyncadd [#allocation5], 4294967280 }
  0x3f   :  { %93 = vsyncpa [#allocation4], 1 }
  0x40   :  { %94 = vsyncpa [#allocation7], 1 }
  0x41   :  { %95 = vsyncpa [#allocation5], 1 }

</bundles_post_ra>
